<compile_context>
chip_gen: v5e
topology: v5e:2x2
jax: 0.10.0
libtpu: 0.0.40
codegen_flags: <defaults>
</compile_context>

<pallas_src>
import functools

import jax
import jax.numpy as jnp
from jax.experimental import pallas as pl
from jax.experimental.pallas import tpu as pltpu


def _round_up(x: int, m: int) -> int:
    return ((x + m - 1) // m) * m


def _cdiv(a: int, b: int) -> int:
    return -(-a // b)


def _mlp_value_kernel(x_ref, w1_ref, b1_ref, w2_ref, b2_ref, w3_ref, b3_ref, o_ref):
    """Fused value-MLP forward for one batch tile.

    x_ref : (TB, S) f32 batch tile (batch on sublanes, features on lanes)
    w1_ref: (S, H) bf16   w2_ref: (H, H) bf16   w3_ref: (1, H) bf16
    b1/b2 : (1, H) f32    b3: (1, 1) f32
    o_ref : (1, TB) f32 lane-dense output row (one value per batch element)
    """
    x = x_ref[...].astype(jnp.bfloat16)  # bf16 MXU operand; DMA stays f32

    h1 = jnp.dot(x, w1_ref[...], preferred_element_type=jnp.float32) + b1_ref[...]
    h1 = jnp.maximum(h1, 0.0).astype(jnp.bfloat16)   # ReLU in f32, then bf16 for MXU

    h2 = jnp.dot(h1, w2_ref[...], preferred_element_type=jnp.float32) + b2_ref[...]
    h2 = jnp.maximum(h2, 0.0).astype(jnp.bfloat16)

    # fc3: (1,H) x (TB,H)^T -> (1,TB): lane-dense output (full-width vst,
    # all 128 MXU output lanes used) instead of an N=1 matmul + masked store.
    out_row = jax.lax.dot_general(
        w3_ref[...], h2,
        dimension_numbers=(((1,), (1,)), ((), ())),
        preferred_element_type=jnp.float32,
    ) + b3_ref[...]
    o_ref[...] = out_row.astype(o_ref.dtype)


@functools.partial(jax.jit, static_argnames=("batch_tile",))
def ppo_value_forward(x, w1, b1, w2, b2, w3_row, b3, *, batch_tile=2048):
    """Forward pass: relu(x@w1+b1) -> relu(.@w2+b2) -> .@w3^T+b3, shape (B, 1)."""
    B, S = x.shape
    H = w1.shape[1]

    # Batch tile: lane-aligned (multiple of 128), as large as batch_tile allows,
    # but capped at round_up(cdiv(B,2),128) so B > 128 always gives >= 2 grid
    # steps -> "parallel" axis actually shards across v7x's two TensorCores.
    tb = max(128, min(batch_tile, _round_up(_cdiv(B, 2), 128)))
    grid_b = _cdiv(B, tb)
    b_pad = grid_b * tb  # padded lane-dense OUTPUT slab only; x is NOT padded

    # bf16 weight operands for the MXU (biases stay f32 for f32 bias-add/ReLU).
    w1 = w1.astype(jnp.bfloat16)
    w2 = w2.astype(jnp.bfloat16)
    w3_row = w3_row.astype(jnp.bfloat16)

    # Constant block index => weights fetched once, VMEM-resident every step.
    full = lambda shape: pl.BlockSpec(shape, lambda i: (0, 0))

    out_row = pl.pallas_call(
        _mlp_value_kernel,
        out_shape=jax.ShapeDtypeStruct((1, b_pad), jnp.float32),
        grid_spec=pltpu.PrefetchScalarGridSpec(
            num_scalar_prefetch=0,
            grid=(grid_b,),
            in_specs=[
                # x tile: the only per-step DMA; last block may be partial
                # (tail rows unspecified, discarded by the wrapper slice).
                pl.BlockSpec((tb, S), lambda i: (i, 0)),
                full((S, H)),   # w1 (bf16)
                full((1, H)),   # b1 (f32)
                full((H, H)),   # w2 (bf16)
                full((1, H)),   # b2 (f32)
                full((1, H)),   # w3 row (bf16)
                full((1, 1)),   # b3 (f32)
            ],
            out_specs=pl.BlockSpec((1, tb), lambda i: (0, i)),  # lane-dense slab
        ),
        compiler_params=pltpu.CompilerParams(
            dimension_semantics=("parallel",),
            # VMEM at tb=2048 is only a few MiB (double-buffered lane-padded x
            # tile + small activations); only set vmem_limit_bytes if tb is
            # pushed past ~8192 rows (v7x's 32 MiB scoped / 64 MiB physical).
        ),
    )(x, w1, b1, w2, b2, w3_row, b3)

    # (1, b_pad) lane-dense row -> (B, 1) column, matching the PyTorch module.
    return out_row.reshape(b_pad, 1)[:B]


def init_params(key, state_size, hidden_size=64):
    """Deterministic PyTorch-Linear-style init (uniform +-1/sqrt(fan_in)).

    w1/w2 are stored transposed to (in, out) for the kernel; w3 is the (1, H)
    row (PyTorch's native (out, in) layout for fc3); biases are (1, out).
    """
    k1, k2, k3, k4, k5, k6 = jax.random.split(key, 6)

    def linear(kw, kb, fan_in, fan_out, *, w_shape):
        bound = 1.0 / jnp.sqrt(fan_in)
        w = jax.random.uniform(kw, w_shape, jnp.float32, -bound, bound)
        b = jax.random.uniform(kb, (1, fan_out), jnp.float32, -bound, bound)
        return w, b

    w1, b1 = linear(k1, k2, state_size, hidden_size, w_shape=(state_size, hidden_size))
    w2, b2 = linear(k3, k4, hidden_size, hidden_size, w_shape=(hidden_size, hidden_size))
    w3, b3 = linear(k5, k6, hidden_size, 1, w_shape=(1, hidden_size))  # (1, H) row
    return w1, b1, w2, b2, w3, b3


def reference_forward(x, w1, b1, w2, b2, w3_row, b3):
    h1 = jnp.maximum(x @ w1 + b1, 0.0)
    h2 = jnp.maximum(h1 @ w2 + b2, 0.0)
    return h2 @ w3_row.T + b3


if __name__ == "__main__":
    state_size = 16
    hidden_size = 64   # module default
    batch = 256        # -> tb=128, grid=(2,): exercises the 2-TC 'parallel' path

    key = jax.random.PRNGKey(0)
    kx, kp = jax.random.split(key)
    x = jax.random.normal(kx, (batch, state_size), jnp.float32)
    params = init_params(kp, state_size, hidden_size)

    out = jax.block_until_ready(ppo_value_forward(x, *params))
    ref = reference_forward(x, *params)
    assert out.shape == (batch, 1), out.shape
    # bf16 MXU operands -> loosened tolerance vs the f32 reference.
    assert jnp.allclose(out, ref, atol=5e-2, rtol=5e-2), "mismatch vs reference"

    # Ragged batch (exercises the partial-last-block path, no wrapper jnp.pad).
    x_small = jax.random.normal(kx, (50, state_size), jnp.float32)
    out_small = jax.block_until_ready(ppo_value_forward(x_small, *params))
    ref_small = reference_forward(x_small, *params)
    assert out_small.shape == (50, 1), out_small.shape
    assert jnp.allclose(out_small, ref_small, atol=5e-2, rtol=5e-2), "ragged mismatch"

    print("KERNEL_OK")
</pallas_src>

<mosaic_0001>
module attributes {stable_mosaic.version = 11 : i64} {
  func.func @_mlp_value_kernel(%arg0: i32, %arg1: memref<128x16xf32, #tpu.memory_space<vmem>>, %arg2: memref<16x64xbf16, #tpu.memory_space<vmem>>, %arg3: memref<1x64xf32, #tpu.memory_space<vmem>>, %arg4: memref<64x64xbf16, #tpu.memory_space<vmem>>, %arg5: memref<1x64xf32, #tpu.memory_space<vmem>>, %arg6: memref<1x64xbf16, #tpu.memory_space<vmem>>, %arg7: memref<1x1xf32, #tpu.memory_space<vmem>>, %arg8: memref<1x128xf32, #tpu.memory_space<vmem>>) attributes {dimension_semantics = [#tpu.dimension_semantics<parallel>], iteration_bounds = array<i64: 2>, scalar_prefetch = 0 : i64, scratch_operands = 0 : i64, tpu.core_type = #tpu.core_type<tc>, window_params = [{transform_indices = @transform_0, window_bounds = array<i64: 128, 16>}, {pipeline_mode = #tpu.pipeline_mode<synchronous>, transform_indices = @transform_1, window_bounds = array<i64: 16, 64>}, {pipeline_mode = #tpu.pipeline_mode<synchronous>, transform_indices = @transform_2, window_bounds = array<i64: 1, 64>}, {pipeline_mode = #tpu.pipeline_mode<synchronous>, transform_indices = @transform_3, window_bounds = array<i64: 64, 64>}, {pipeline_mode = #tpu.pipeline_mode<synchronous>, transform_indices = @transform_4, window_bounds = array<i64: 1, 64>}, {pipeline_mode = #tpu.pipeline_mode<synchronous>, transform_indices = @transform_5, window_bounds = array<i64: 1, 64>}, {pipeline_mode = #tpu.pipeline_mode<synchronous>, transform_indices = @transform_6, window_bounds = array<i64: 1, 1>}, {transform_indices = @transform_7, window_bounds = array<i64: 1, 128>}]} {
    %c0 = arith.constant 0 : index
    %c0_0 = arith.constant 0 : index
    %0 = vector.load %arg1[%c0, %c0_0] : memref<128x16xf32, #tpu.memory_space<vmem>>, vector<128x16xf32>
    %1 = arith.truncf %0 : vector<128x16xf32> to vector<128x16xbf16>
    %c0_1 = arith.constant 0 : index
    %c0_2 = arith.constant 0 : index
    %2 = vector.load %arg2[%c0_1, %c0_2] : memref<16x64xbf16, #tpu.memory_space<vmem>>, vector<16x64xbf16>
    %cst = arith.constant dense<0.000000e+00> : vector<128x64xf32>
    %3 = tpu.matmul %1, %2, %cst {dimension_numbers = #tpu.dot_dimension_numbers<[1], [0], [0], [1], [0, 0, 1, 1], [], []>} : vector<128x16xbf16>, vector<16x64xbf16>, vector<128x64xf32> -> vector<128x64xf32>
    %c0_3 = arith.constant 0 : index
    %c0_4 = arith.constant 0 : index
    %4 = vector.load %arg3[%c0_3, %c0_4] : memref<1x64xf32, #tpu.memory_space<vmem>>, vector<1x64xf32>
    %5 = vector.broadcast %4 : vector<1x64xf32> to vector<128x64xf32>
    %6 = arith.addf %3, %5 : vector<128x64xf32>
    %cst_5 = arith.constant 0.000000e+00 : f32
    %7 = vector.broadcast %cst_5 : f32 to vector<128x64xf32>
    %8 = arith.maximumf %6, %7 : vector<128x64xf32>
    %9 = arith.truncf %8 : vector<128x64xf32> to vector<128x64xbf16>
    %c0_6 = arith.constant 0 : index
    %c0_7 = arith.constant 0 : index
    %10 = vector.load %arg4[%c0_6, %c0_7] : memref<64x64xbf16, #tpu.memory_space<vmem>>, vector<64x64xbf16>
    %cst_8 = arith.constant dense<0.000000e+00> : vector<128x64xf32>
    %11 = tpu.matmul %9, %10, %cst_8 {dimension_numbers = #tpu.dot_dimension_numbers<[1], [0], [0], [1], [0, 0, 1, 1], [], []>} : vector<128x64xbf16>, vector<64x64xbf16>, vector<128x64xf32> -> vector<128x64xf32>
    %c0_9 = arith.constant 0 : index
    %c0_10 = arith.constant 0 : index
    %12 = vector.load %arg5[%c0_9, %c0_10] : memref<1x64xf32, #tpu.memory_space<vmem>>, vector<1x64xf32>
    %13 = vector.broadcast %12 : vector<1x64xf32> to vector<128x64xf32>
    %14 = arith.addf %11, %13 : vector<128x64xf32>
    %cst_11 = arith.constant 0.000000e+00 : f32
    %15 = vector.broadcast %cst_11 : f32 to vector<128x64xf32>
    %16 = arith.maximumf %14, %15 : vector<128x64xf32>
    %17 = arith.truncf %16 : vector<128x64xf32> to vector<128x64xbf16>
    %c0_12 = arith.constant 0 : index
    %c0_13 = arith.constant 0 : index
    %18 = vector.load %arg6[%c0_12, %c0_13] : memref<1x64xbf16, #tpu.memory_space<vmem>>, vector<1x64xbf16>
    %cst_14 = arith.constant dense<0.000000e+00> : vector<1x128xf32>
    %19 = tpu.matmul %18, %17, %cst_14 {dimension_numbers = #tpu.dot_dimension_numbers<[1], [1], [0], [0], [0, 0, 1, 0], [], []>} : vector<1x64xbf16>, vector<128x64xbf16>, vector<1x128xf32> -> vector<1x128xf32>
    %c0_15 = arith.constant 0 : index
    %c0_16 = arith.constant 0 : index
    %20 = vector.load %arg7[%c0_15, %c0_16] : memref<1x1xf32, #tpu.memory_space<vmem>>, vector<1x1xf32>
    %21 = vector.broadcast %20 : vector<1x1xf32> to vector<1x128xf32>
    %22 = arith.addf %19, %21 : vector<1x128xf32>
    %c0_17 = arith.constant 0 : index
    %c0_18 = arith.constant 0 : index
    %23 = vector.load %arg8[%c0_17, %c0_18] : memref<1x128xf32, #tpu.memory_space<vmem>>, vector<1x128xf32>
    tpu.vector_store %arg8[%c0_17, %c0_18], %22 {strides = array<i32>} : memref<1x128xf32, #tpu.memory_space<vmem>>, vector<1x128xf32>,
    return
  }
  func.func @transform_0(%arg0: i32) -> (i32, i32) {
    %c0_i32 = arith.constant 0 : i32
    %c0_i32_0 = arith.constant 0 : i32
    return %arg0, %c0_i32 : i32, i32
  }
  func.func @transform_1(%arg0: i32) -> (i32, i32) {
    %c0_i32 = arith.constant 0 : i32
    %c0_i32_0 = arith.constant 0 : i32
    %c0_i32_1 = arith.constant 0 : i32
    return %c0_i32, %c0_i32_0 : i32, i32
  }
  func.func @transform_2(%arg0: i32) -> (i32, i32) {
    %c0_i32 = arith.constant 0 : i32
    %c0_i32_0 = arith.constant 0 : i32
    %c0_i32_1 = arith.constant 0 : i32
    return %c0_i32, %c0_i32_0 : i32, i32
  }
  func.func @transform_3(%arg0: i32) -> (i32, i32) {
    %c0_i32 = arith.constant 0 : i32
    %c0_i32_0 = arith.constant 0 : i32
    %c0_i32_1 = arith.constant 0 : i32
    return %c0_i32, %c0_i32_0 : i32, i32
  }
  func.func @transform_4(%arg0: i32) -> (i32, i32) {
    %c0_i32 = arith.constant 0 : i32
    %c0_i32_0 = arith.constant 0 : i32
    %c0_i32_1 = arith.constant 0 : i32
    return %c0_i32, %c0_i32_0 : i32, i32
  }
  func.func @transform_5(%arg0: i32) -> (i32, i32) {
    %c0_i32 = arith.constant 0 : i32
    %c0_i32_0 = arith.constant 0 : i32
    %c0_i32_1 = arith.constant 0 : i32
    return %c0_i32, %c0_i32_0 : i32, i32
  }
  func.func @transform_6(%arg0: i32) -> (i32, i32) {
    %c0_i32 = arith.constant 0 : i32
    %c0_i32_0 = arith.constant 0 : i32
    %c0_i32_1 = arith.constant 0 : i32
    return %c0_i32, %c0_i32_0 : i32, i32
  }
  func.func @transform_7(%arg0: i32) -> (i32, i32) {
    %c0_i32 = arith.constant 0 : i32
    %c0_i32_0 = arith.constant 0 : i32
    return %c0_i32, %arg0 : i32, i32
  }
}

</mosaic_0001>

<bundles_post_ra>
// kernel: ppo_value_forward.1
= control target key start
LH: loop header
LB: loop body
LE: loop exit
PB: predicated region body
PF: predicated region fallthrough
CT: control target
= control target key end

     0   :  { %s1026_s0 = inlined_call_operand.vmem [shape: f32[256,16], index: 0, kind: input, shape index: {}]   ;;  %s1027_s1 = inlined_call_operand.vmem [shape: bf16[16,64], index: 1, kind: input, shape index: {}]   ;;  %s1028_s2 = inlined_call_operand.vmem [shape: f32[1,64], index: 2, kind: input, shape index: {}]   ;;  %s1029_s3 = inlined_call_operand.vmem [shape: bf16[64,64], index: 3, kind: input, shape index: {}]   ;;  %s1030_s4 = inlined_call_operand.vmem [shape: f32[1,64], index: 4, kind: input, shape index: {}]   ;;  %s1031_s5 = inlined_call_operand.vmem [shape: bf16[1,64], index: 5, kind: input, shape index: {}]   ;;  %s1032_s6 = inlined_call_operand.<no memory space> [shape: f32[1,1], index: 6, kind: input, shape index: {}]   ;;  %s1033_s7 = inlined_call_operand.hbm [shape: f32[1,256], index: 7, kind: output, shape index: {}]  }
   0x1   :  { %v12_v0 = vstv %s1032_s6 }
   0x2   :  { %13 = vst [vmem:[#allocation2] sm:$0x1] %v12_v0 }
   0x3   :  { %14 = vsyncpa [#allocation4], 0 }
   0x4   :  { %16 = vsyncpa [#allocation4 + $0x1], 0  ;;  %s872_s26 = smov 0   ;;  %s874_s27 = smov 0  }
   0x5   :  { %s876_s28 = smov 0   ;;  %s878_s29 = smov 0  }
   0x6 LB: > { %s893_s6 = sadd.s32 4294967295, %s826_s29   ;;  %s666_s30 = sadd.s32 4294967294, %s826_s29   ;;  %s826_s29 = sphi %s878_s29, %s1039_s29   ;;  %s822_s28 = sphi %s876_s28, %s1038_s28   ;;  %s818_s27 = sphi %s874_s27, %s1037_s27   ;;  %s814_s26 = sphi %s872_s26, %s1036_s26  }
   0x7   : > { %s897_s8 = sadd.s32 1, %s826_s29   ;;  %s181_s9 = sadd.s32 1, %s822_s28 }
   0x8   : > { %s178_s10 = ssub.s32 %s826_s29, %s897_s8  ;;  %p191_p0 = scmp.ne.s32.totalorder %s822_s28, %s818_s27 }
   0x9   : > { %p179_p1 = scmp.eq.s32.totalorder %s178_s10, 0  ;;  %p192_p2 = scmp.eq.s32.totalorder %s893_s6, 1 }
   0xa   : > { %p197_p3 = scmp.ne.s32.totalorder %s818_s27, %s814_s26  ;;  %p198_p4 = scmp.eq.s32.totalorder %s666_s30, 1 }
   0xb   : > { %s908_s11 = scalar_select %p179_p1, %s822_s28, %s181_s9  }
   0xc   : > { %p910_p5 = por %p192_p2, %p191_p0  ;;  %p914_p6 = por %p198_p4, %p197_p3 }
   0xd   : > { %p669_p7 = scmp.ge.s32.totalorder %s826_s29, 1  ;;  %p243_p8 = scmp.lt.s32.totalorder %s826_s29, 3 }
   0xf   : > { %p244_p9 = pnand %p669_p7, %p243_p8 }
  0x10   : > { %s670_s16 = sshll.u32 (!%p244_p9), %s893_s6, 4  ;;  %s607_s23 = scalar_lea.hbm (!%p244_p9), %s1033_s7, %s893_s6 }
  0x11   : > { %247 = sbr.rel (%p244_p9) target bundleno = 630 (0x276), region = 48  ;;  %p275_p10 = scmp.lt.s32.totalorder (!%p244_p9), %s670_s16, 31 }
  0x12   : > { %s611_s30 = sshll.u32 (!%p244_p9), %s607_s23, 4  ;;  %s784_s6 = scalar_lea.hbm (!%p244_p9), %s1033_s7, 2  ;;  %s612_s30 = int_to_ptr.hbm [resolvable:$true] %s611_s30 }
  0x13   : > { %s778_s10 = sshra.s32 (!%p244_p9), %s612_s30, 4  ;;  %s779_s10 = int_to_ptr.hbm [resolvable:$true] %s778_s10 }
  0x14   : > { %s780_s14 = scalar_lea.hbm (!%p244_p9), %s779_s10, 1  ;;  %p785_p0 = scmp.lt.s32.totalorder (!%p244_p9), %s779_s10, %s1033_s7 }
  0x15   : > { %p781_p11 = scmp.ne.s32.totalorder (!%p244_p9), %s779_s10, %s780_s14  ;;  %p786_p1 = scmp.lt.s32.totalorder (!%p244_p9), %s784_s6, %s780_s14 }
  0x16   : > { %v711_v1 = vld [vmem:[%s1027_s1] sm:$0xff]  ;;  %s1041_s16 = smov (!%p275_p10, %s670_s16), 31  ;;  %vm317_vm0 = vcmask 130048   ;;  %v715_v26 = vld [vmem:[%s1029_s3 + $0x18] sm:$0xff]  ;;  %v714_v27 = vld [vmem:[%s1029_s3 + $0x10] sm:$0xff]  ;;  %vm451_vm1 = vcmask 523264  }
  0x17   : > { %349 = vmatpush.bf16.msra.mxu0 %v711_v1  ;;  %716 = vmatpush.bf16.msra.mxu3 %v711_v1  ;;  %s671_s17 = sshll.u32 %s1041_s16, 3  ;;  %v713_v28 = vld [vmem:[%s1029_s3 + $0x8] sm:$0xff]  ;;  %v712_v29 = vld [vmem:[%s1029_s3] sm:$0xff]  ;;  %p782_p12 = pnand %p781_p11, %p910_p5 }
  0x18   : > { %s927_s20 = scalar_lea.vmem %s1026_s0, %s671_s17  ;;  %480 = vmatpush.bf16.msra.mxu1 %v715_v26  ;;  %v762_v31 = vld [vmem:[%s1028_s2] ss:$0 sm:$0xff]  ;;  %p787_p2 = por %p786_p1, %p785_p0 }
  0x19   : > { %v281_v2 = vld [vmem:[%s927_s20] sm:$0xff]  ;;  %v282_v3 = vld [vmem:[%s927_s20 + $0x8] sm:$0xff]  ;;  %v283_v5 = vld [vmem:[%s927_s20 + $0x10] sm:$0xff]  ;;  %p783_p13 = pneg %p782_p12 }
  0x1a   : > { %v297_v4 = vpack.c.bf16 %v282_v3, %v281_v2  ;;  %v284_v6 = vld [vmem:[%s927_s20 + $0x18] sm:$0xff]  ;;  %v285_v8 = vld [vmem:[%s927_s20 + $0x20] sm:$0xff]  ;;  %v286_v9 = vld [vmem:[%s927_s20 + $0x28] sm:$0xff] }
  0x1b   : > { %v298_v7 = vpack.c.bf16 %v284_v6, %v283_v5  ;;  %v299_v10 = vpack.c.bf16 %v286_v9, %v285_v8  ;;  %v287_v11 = vld [vmem:[%s927_s20 + $0x30] sm:$0xff]  ;;  %v288_v12 = vld [vmem:[%s927_s20 + $0x38] sm:$0xff]  ;;  %v293_v14 = vld [vmem:[%s927_s20 + $0x60] sm:$0xff]  ;;  %717 = vmatpush.bf16.msrb.mxu3 %v715_v26  ;;  %p788_p3 = pnand %p787_p2, %p783_p13 }
  0x1c   : > { %676 = vmatmul.msk.bf16.vlgmr.msra.gmra.mxu0 %vm317_vm0, %v297_v4  ;;  %v300_v13 = vpack.c.bf16 %v288_v12, %v287_v11  ;;  %v294_v15 = vld [vmem:[%s927_s20 + $0x68] sm:$0xff]  ;;  %v289_v17 = vld [vmem:[%s927_s20 + $0x40] sm:$0xff]  ;;  %v295_v19 = vld [vmem:[%s927_s20 + $0x70] sm:$0xff]  ;;  %481 = vmatpush.bf16.msra.mxu1 %v714_v27 }
  0x1d   : > { %v303_v16 = vpack.c.bf16 %v294_v15, %v293_v14  ;;  %v290_v18 = vld [vmem:[%s927_s20 + $0x48] sm:$0xff]  ;;  %v296_v20 = vld [vmem:[%s927_s20 + $0x78] sm:$0xff]  ;;  %v291_v23 = vld [vmem:[%s927_s20 + $0x50] sm:$0xff] }
  0x1e   : > { %v301_v21 = vpack.c.bf16 %v290_v18, %v289_v17  ;;  %v304_v22 = vpack.c.bf16 %v296_v20, %v295_v19  ;;  %v292_v24 = vld [vmem:[%s927_s20 + $0x58] sm:$0xff]  ;;  %s272_s20 = sand.u32 1, %s818_s27  }
  0x1f   : > { %682 = vmatmul.msk.bf16.vlgmr.msra.gmra.mxu3 %vm317_vm0, %v303_v16  ;;  %v302_v25 = vpack.c.bf16 %v292_v24, %v291_v23  ;;  %v763_v24 = vld [vmem:[%s1030_s4] ss:$0 sm:$0xff]  ;;  %s273_s24 = scalar_lea.vmem [#allocation3], %s272_s20  ;;  %s599_s9 = scalar_lea.sflag [#allocation4], %s272_s20 }
  0x20   : > { %718 = vmatpush.bf16.msrb.mxu3 %v714_v27  ;;  %482 = vmatpush.bf16.msra.mxu1 %v713_v28  ;;  %s609_s25 = sshll.u32 %s273_s24, 4  ;;  %s610_s25 = int_to_ptr.vmem [resolvable:$true] %s609_s25 }
  0x24   : > { %719 = vmatpush.bf16.msrb.mxu3 %v713_v28  ;;  %483 = vmatpush.bf16.msra.mxu1 %v712_v29 }
  0x28   : > { %720 = vmatpush.bf16.msrb.mxu3 %v712_v29 }
  0x2c   : > { %677 = vmatmul.msk.bf16.gmra.mxu0 %vm317_vm0, %v298_v7 }
  0x2f   : > { %683 = vmatmul.msk.bf16.gmra.mxu3 %vm317_vm0, %v304_v22 }
  0x3c   : > { %678 = vmatmul.msk.bf16.gmra.mxu0 %vm317_vm0, %v299_v10 }
  0x4c   : > { %679 = vmatmul.msk.bf16.gmra.mxu0 %vm317_vm0, %v300_v13 }
  0x5c   : > { %680 = vmatmul.msk.bf16.gmra.mxu0 %vm317_vm0, %v301_v21 }
  0x6c   : > { %681 = vmatmul.msk.bf16.gmra.mxu0 %vm317_vm0, %v302_v25 }
  0x99   : > { %v351_v30 = vpop.f32.mrf.mxu0 }
  0x9a   : > { %v352_v32 = vadd.f32 %v762_v31, %v351_v30 }
  0x9c   : > { %v391_v35 = vmax.f32 %v352_v32, 0.0 }
  0xa1   : > { %v353_v33 = vpop.f32.mrf.mxu0 }
  0xa2   : > { %v354_v34 = vadd.f32 %v762_v31, %v353_v33  ;;  %v381_v3 = vpop.f32.mrf.mxu3 }
  0xa3   : > { %v382_v11 = vadd.f32 %v762_v31, %v381_v3 }
  0xa4   : > { %v392_v36 = vmax.f32 %v354_v34, 0.0 }
  0xa5   : > { %v403_v14 = vmax.f32 %v382_v11, 0.0 }
  0xa6   : > { %v407_v37 = vpack.c.bf16 %v392_v36, %v391_v35 }
  0xa8   : > { %700 = vmatmul.msk.bf16.vlgmr.msra.gmra.mxu1 %vm451_vm1, %v407_v37 }
  0xa9   : > { %v356_v38 = vpop.f32.mrf.mxu0 }
  0xaa   : > { %v357_v39 = vadd.f32 %v762_v31, %v356_v38  ;;  %v383_v10 = vpop.f32.mrf.mxu3 }
  0xab   : > { %v384_v12 = vadd.f32 %v762_v31, %v383_v10 }
  0xac   : > { %v393_v42 = vmax.f32 %v357_v39, 0.0 }
  0xad   : > { %v404_v15 = vmax.f32 %v384_v12, 0.0 }
  0xaf   : > { %v413_v16 = vpack.c.bf16 %v404_v15, %v403_v14 }
  0xb1   : > { %v358_v40 = vpop.f32.mrf.mxu0 }
  0xb2   : > { %v359_v41 = vadd.f32 %v762_v31, %v358_v40  ;;  %v386_v13 = vpop.f32.mrf.mxu3 }
  0xb3   : > { %v387_v18 = vadd.f32 %v762_v31, %v386_v13 }
  0xb4   : > { %v394_v43 = vmax.f32 %v359_v41, 0.0 }
  0xb5   : > { %v405_v20 = vmax.f32 %v387_v18, 0.0 }
  0xb6   : > { %v408_v44 = vpack.c.bf16 %v394_v43, %v393_v42 }
  0xb8   : > { %701 = vmatmul.msk.bf16.gmra.mxu1 %vm451_vm1, %v408_v44 }
  0xb9   : > { %v361_v45 = vpop.f32.mrf.mxu0 }
  0xba   : > { %v362_v46 = vadd.f32 %v762_v31, %v361_v45  ;;  %v388_v17 = vpop.f32.mrf.mxu3 }
  0xbb   : > { %v389_v19 = vadd.f32 %v762_v31, %v388_v17 }
  0xbc   : > { %v395_v49 = vmax.f32 %v362_v46, 0.0 }
  0xbd   : > { %v406_v21 = vmax.f32 %v389_v19, 0.0  ;;  %v550_v19 = vld [vmem:[#allocation2] sm:$0x1] }
  0xbf   : > { %v414_v22 = vpack.c.bf16 %v406_v21, %v405_v20  ;;  %v828_v20 = vmov 0  }
  0xc0   : > { %761 = vset.pattern.permute.xlu0 %v828_v20 }
  0xc1   : > { %v363_v47 = vpop.f32.mrf.mxu0  ;;  %553 = vperm.xlu0 %761, %v550_v19  }
  0xc2   : > { %v364_v48 = vadd.f32 %v762_v31, %v363_v47 }
  0xc4   : > { %v396_v50 = vmax.f32 %v364_v48, 0.0 }
  0xc6   : > { %v409_v51 = vpack.c.bf16 %v396_v50, %v395_v49 }
  0xc8   : > { %702 = vmatmul.msk.bf16.gmra.mxu1 %vm451_vm1, %v409_v51 }
  0xc9   : > { %v366_v52 = vpop.f32.mrf.mxu0 }
  0xca   : > { %v367_v53 = vadd.f32 %v762_v31, %v366_v52 }
  0xcc   : > { %v397_v56 = vmax.f32 %v367_v53, 0.0 }
  0xd1   : > { %v368_v54 = vpop.f32.mrf.mxu0 }
  0xd2   : > { %v369_v55 = vadd.f32 %v762_v31, %v368_v54 }
  0xd4   : > { %v398_v57 = vmax.f32 %v369_v55, 0.0 }
  0xd6   : > { %v410_v58 = vpack.c.bf16 %v398_v57, %v397_v56 }
  0xd8   : > { %703 = vmatmul.msk.bf16.gmra.mxu1 %vm451_vm1, %v410_v58 }
  0xd9   : > { %v371_v59 = vpop.f32.mrf.mxu0 }
  0xda   : > { %v372_v60 = vadd.f32 %v762_v31, %v371_v59 }
  0xdc   : > { %v399_v63 = vmax.f32 %v372_v60, 0.0 }
  0xe1   : > { %v373_v61 = vpop.f32.mrf.mxu0 }
  0xe2   : > { %v374_v62 = vadd.f32 %v762_v31, %v373_v61 }
  0xe4   : > { %v400_v0 = vmax.f32 %v374_v62, 0.0 }
  0xe6   : > { %v411_v1 = vpack.c.bf16 %v400_v0, %v399_v63 }
  0xe8   : > { %704 = vmatmul.msk.bf16.gmra.mxu1 %vm451_vm1, %v411_v1 }
  0xe9   : > { %v376_v2 = vpop.f32.mrf.mxu0 }
  0xea   : > { %v377_v4 = vadd.f32 %v762_v31, %v376_v2 }
  0xec   : > { %v401_v7 = vmax.f32 %v377_v4, 0.0 }
  0xf1   : > { %v378_v5 = vpop.f32.mrf.mxu0 }
  0xf2   : > { %v379_v6 = vadd.f32 %v762_v31, %v378_v5 }
  0xf4   : > { %v402_v8 = vmax.f32 %v379_v6, 0.0 }
  0xf6   : > { %v412_v9 = vpack.c.bf16 %v402_v8, %v401_v7 }
  0xf8   : > { %705 = vmatmul.msk.bf16.vlgmr.msrb.gmra.mxu3 %vm451_vm1, %v412_v9 }
 0x108   : > { %706 = vmatmul.msk.bf16.gmra.mxu3 %vm451_vm1, %v413_v16 }
 0x118   : > { %707 = vmatmul.msk.bf16.gmra.mxu3 %vm451_vm1, %v414_v22 }
 0x125   : > { %v485_v23 = vpop.f32.mrf.mxu1 }
 0x126   : > { %v486_v25 = vadd.f32 %v763_v24, %v485_v23 }
 0x128   : > { %v525_v28 = vmax.f32 %v486_v25, 0.0 }
 0x12d   : > { %v487_v26 = vpop.f32.mrf.mxu1 }
 0x12e   : > { %v488_v27 = vadd.f32 %v763_v24, %v487_v26  ;;  %v549_v26 = vld [vmem:[%s1031_s5] sm:$0x1] }
 0x130   : > { %v526_v29 = vmax.f32 %v488_v27, 0.0 }
 0x132   : > { %v979_v30 = vpack.c.bf16 %v526_v29, %v525_v28 }
 0x133   : > { %v554_v27 = vpop.permute.xlu0 %553 }
 0x134   : > { %v556_v28 = vperm.slane %v554_v27, 0 }
 0x135   : > { %v490_v32 = vpop.f32.mrf.mxu1 }
 0x136   : > { %v491_v33 = vadd.f32 %v763_v24, %v490_v32 }
 0x138   : > { %v527_v35 = vmax.f32 %v491_v33, 0.0 }
 0x13d   : > { %v492_v31 = vpop.f32.mrf.mxu1 }
 0x13e   : > { %v493_v34 = vadd.f32 %v763_v24, %v492_v31 }
 0x140   : > { %v528_v36 = vmax.f32 %v493_v34, 0.0 }
 0x142   : > { %v542_v37 = vpack.c.bf16 %v528_v36, %v527_v35 }
 0x144   : > { %v564_v25 = vsel %vm451_vm1, %v542_v37, 0 }
 0x145   : > { %v495_v39 = vpop.f32.mrf.mxu1 }
 0x146   : > { %v496_v16 = vadd.f32 %v763_v24, %v495_v39 }
 0x148   : > { %v529_v21 = vmax.f32 %v496_v16, 0.0 }
 0x14d   : > { %v497_v41 = vpop.f32.mrf.mxu1 }
 0x14e   : > { %v498_v14 = vadd.f32 %v763_v24, %v497_v41 }
 0x150   : > { %v530_v17 = vmax.f32 %v498_v14, 0.0 }
 0x152   : > { %v543_v22 = vpack.c.bf16 %v530_v17, %v529_v21 }
 0x154   : > { %v567_v23 = vsel %vm451_vm1, %v543_v22, 0 }
 0x155   : > { %v500_v44 = vpop.f32.mrf.mxu1 }
 0x156   : > { %v501_v10 = vadd.f32 %v763_v24, %v500_v44 }
 0x158   : > { %v531_v13 = vmax.f32 %v501_v10, 0.0 }
 0x15d   : > { %v502_v46 = vpop.f32.mrf.mxu1 }
 0x15e   : > { %v503_v8 = vadd.f32 %v763_v24, %v502_v46 }
 0x160   : > { %v532_v11 = vmax.f32 %v503_v8, 0.0 }
 0x162   : > { %v544_v15 = vpack.c.bf16 %v532_v11, %v531_v13 }
 0x164   : > { %v570_v18 = vsel %vm451_vm1, %v544_v15, 0 }
 0x165   : > { %v505_v55 = vpop.f32.mrf.mxu1 }
 0x166   : > { %v506_v4 = vadd.f32 %v763_v24, %v505_v55 }
 0x168   : > { %v533_v7 = vmax.f32 %v506_v4, 0.0 }
 0x16d   : > { %v507_v0 = vpop.f32.mrf.mxu1 }
 0x16e   : > { %v508_v2 = vadd.f32 %v763_v24, %v507_v0 }
 0x170   : > { %v534_v5 = vmax.f32 %v508_v2, 0.0 }
 0x172   : > { %v545_v9 = vpack.c.bf16 %v534_v5, %v533_v7 }
 0x174   : > { %v573_v12 = vsel %vm451_vm1, %v545_v9, 0 }
 0x17b   : > { %v510_v38 = vpop.f32.mrf.mxu3 }
 0x17c   : > { %v511_v61 = vadd.f32 %v763_v24, %v510_v38 }
 0x17e   : > { %v535_v1 = vmax.f32 %v511_v61, 0.0 }
 0x183   : > { %v512_v40 = vpop.f32.mrf.mxu3 }
 0x184   : > { %v513_v59 = vadd.f32 %v763_v24, %v512_v40 }
 0x186   : > { %v536_v62 = vmax.f32 %v513_v59, 0.0 }
 0x188   : > { %v546_v3 = vpack.c.bf16 %v536_v62, %v535_v1 }
 0x18a   : > { %v576_v6 = vsel %vm451_vm1, %v546_v3, 0 }
 0x18b   : > { %v515_v42 = vpop.f32.mrf.mxu3 }
 0x18c   : > { %v516_v53 = vadd.f32 %v763_v24, %v515_v42 }
 0x18e   : > { %v537_v58 = vmax.f32 %v516_v53, 0.0 }
 0x193   : > { %v517_v43 = vpop.f32.mrf.mxu3 }
 0x194   : > { %v518_v50 = vadd.f32 %v763_v24, %v517_v43 }
 0x196   : > { %v538_v56 = vmax.f32 %v518_v50, 0.0 }
 0x198   : > { %v547_v60 = vpack.c.bf16 %v538_v56, %v537_v58 }
 0x19a   : > { %v579_v63 = vsel %vm451_vm1, %v547_v60, 0 }
 0x19b   : > { %v520_v45 = vpop.f32.mrf.mxu3 }
 0x19c   : > { %v521_v47 = vadd.f32 %v763_v24, %v520_v45 }
 0x19e   : > { %v539_v51 = vmax.f32 %v521_v47, 0.0 }
 0x1a3   : > { %v522_v48 = vpop.f32.mrf.mxu3 }
 0x1a4   : > { %v523_v49 = vadd.f32 %v763_v24, %v522_v48  ;;  %v561_v24 = vsel %vm451_vm1, %v979_v30, 0 }
 0x1a6   : > { %v540_v52 = vmax.f32 %v523_v49, 0.0 }
 0x1a8   : > { %v548_v54 = vpack.c.bf16 %v540_v52, %v539_v51 }
 0x1aa   : > { %v582_v57 = vsel %vm451_vm1, %v548_v54, 0 }
 0x1ab   : > { %584 = vmatpush.bf16.xpose.msra.mxu2 %v582_v57 }
 0x1b3   : > { %585 = vmatpush.bf16.xpose.msra.mxu2 %v579_v63 }
 0x1bb   : > { %586 = vmatpush.bf16.xpose.msra.mxu2 %v576_v6 }
 0x1c3   : > { %587 = vmatpush.bf16.xpose.msra.mxu2 %v573_v12 }
 0x1cb   : > { %588 = vmatpush.bf16.xpose.msra.mxu2 %v570_v18 }
 0x1d3   : > { %589 = vmatpush.bf16.xpose.msra.mxu2 %v567_v23 }
 0x1db   : > { %590 = vmatpush.bf16.xpose.msra.mxu2 %v564_v25 }
 0x1e3   : > { %591 = vmatpush.bf16.xpose.msra.mxu2 %v561_v24 }
 0x1ea   : > { %708 = vmatmul.msk.bf16.vlgmr.msra.gmra.mxu2 %vm451_vm1, %v549_v26 }
 0x26d   : > { %v593_v29 = vpop.f32.mrf.mxu2 }
 0x26e   : > { %v594_v30 = vadd.f32 %v593_v29, %v556_v28 }
 0x270   : > { %597 = vst [vmem:[%s273_s24] sm:$0x1] %v594_v30 }
 0x271   : > { %791 = shalt.err (!%p788_p3)
}
 0x272   : > { %721 = dma.vmem_to_hbm [thread:$0]  (%p910_p5), %s610_s25, 16, %s612_s30, %s599_s9  }
 0x275   : > { %v595_v32 = vpop.f32.mrf.mxu2 }
 0x276 PF: > { %p727_p4 = scmp.ge.s32.totalorder %s826_s29, 2  ;;  %s623_s19 = sand.u32 1, %s814_s26  }
 0x277   : > { %s624_s20 = scalar_lea.sflag [#allocation4], %s623_s19 }
 0x278   : > { %p724_p7 = pnand %p727_p4, %p914_p6 }
 0x27a   : > { %p725_p8 = pneg %p724_p7 }
 0x27c   : > { %809 = dma.done.wait (%p725_p8), %s624_s20, 16  }
 0x27d   : > { %811 = vsyncadd (%p725_p8), %s624_s20, 4294967280  ;;  %p19_p9 = scmp.ge.s32.totalorder %s897_s8, 4   ;;  %s1036_s26 = smov %s818_s27 }
 0x27e   : > { %s1037_s27 = smov %s822_s28  ;;  %s1038_s28 = smov %s908_s11 }
 0x27f   : > { %s1039_s29 = smov %s897_s8  ;;  %21 = sbr.rel (!%p19_p9) target bundleno = 6 (0x6), region = 83 }
 0x284   :  { %629 = vsyncpa [#allocation4], 1 }
 0x285   :  { %631 = vsyncpa [#allocation4 + $0x1], 1 }

</bundles_post_ra>
